<compile_context>
chip_gen: v7x
topology: tpu7x:2x2x1
jax: 0.10.0
libtpu: 0.0.40
codegen_flags: <defaults>
</compile_context>

<pallas_src>
import jax
import jax.numpy as jnp
from jax.experimental import pallas as pl
from jax.experimental.pallas import tpu as pltpu

LANES = 128  # pad everything to one (8,128)-aligned, 128-lane-dense tile grid


def gcn_kernel(a_ref, x_ref, w_ref, out_ref):
    # a_ref : (P, P)  symmetric-normalized adjacency, zero-padded
    # x_ref : (P, P)  node features, zero-padded
    # w_ref : (4*P + 8, P) packed params: [W1 | W2 | W3 | Wc_shift | bias(8)]
    # out_ref: (P, P)  combined output: lanes [0:2]=y3, lanes [2:2+C]=logits
    p = a_ref.shape[0]

    a = a_ref[...]
    h = x_ref[...]

    # Static, sublane-aligned views into the single parameter slab.
    w1 = w_ref[0 * p:1 * p, :]
    w2 = w_ref[1 * p:2 * p, :]
    w3 = w_ref[2 * p:3 * p, :]
    wc = w_ref[3 * p:4 * p, :]          # classifier, pre-shifted to lanes 2:2+C
    bias = w_ref[4 * p:4 * p + 8, :]    # rows: b1, b2, b3, bc_shift, 0...
    b1 = bias[0:1, :]
    b2 = bias[1:2, :]
    b3 = bias[2:3, :]
    bc = bias[3:4, :]

    # GCNConv 1: A_hat @ (X W1) + b1 ; ReLU   (X@W first: cheaper ordering)
    h = jnp.dot(h, w1, preferred_element_type=jnp.float32)
    h = jnp.maximum(jnp.dot(a, h, preferred_element_type=jnp.float32) + b1, 0.0)

    # GCNConv 2
    h = jnp.dot(h, w2, preferred_element_type=jnp.float32)
    h = jnp.maximum(jnp.dot(a, h, preferred_element_type=jnp.float32) + b2, 0.0)

    # GCNConv 3
    h = jnp.dot(h, w3, preferred_element_type=jnp.float32)
    y3 = jnp.maximum(jnp.dot(a, h, preferred_element_type=jnp.float32) + b3, 0.0)

    # Combined lane-dense output:
    #   wc has zeros in lanes [0:2], wc values shifted to lanes [2:2+C];
    #   so lanes [0:2] = y3 (exact passthrough), lanes [2:2+C] = y3@Wc + bc.
    out_ref[...] = y3 + jnp.dot(y3, wc, preferred_element_type=jnp.float32) + bc


def _pad2d(a, rows, cols):
    return jnp.pad(a, ((0, rows - a.shape[0]), (0, cols - a.shape[1])))


def pack_params(params, p):
    """Pack the 8 tiny parameters into one (4*p + 8, p) f32 slab (1 DMA)."""
    w1, b1, w2, b2, w3, b3, wc, bc = params
    hid = wc.shape[0]   # y3 width (2)
    c = wc.shape[1]     # num classes (4)

    # Classifier weight shifted right by `hid` lanes so the combined output
    # keeps y3 untouched in lanes [0:hid) and logits in lanes [hid:hid+c).
    wc_shift = jnp.zeros((p, p), jnp.float32).at[:hid, hid:hid + c].set(wc)

    bias = jnp.zeros((8, p), jnp.float32)
    bias = bias.at[0, :b1.shape[1]].set(b1[0])
    bias = bias.at[1, :b2.shape[1]].set(b2[0])
    bias = bias.at[2, :b3.shape[1]].set(b3[0])
    bias = bias.at[3, hid:hid + c].set(bc[0])   # shifted with the classifier

    return jnp.concatenate(
        [_pad2d(w1, p, p), _pad2d(w2, p, p), _pad2d(w3, p, p), wc_shift, bias],
        axis=0)


def gcn_forward(a_hat, x, params):
    """params = (w1, b1, w2, b2, w3, b3, wc, bc); biases are shaped (1, k)."""
    n, f = x.shape
    hid = params[6].shape[0]          # 2
    num_classes = params[6].shape[1]  # 4
    p = LANES
    assert n <= p and f <= p and hid + num_classes <= p

    # Wrapper-side layout plumbing: pad to lane-dense 128x128 f32 tiles.
    a_pad = _pad2d(a_hat, p, p)
    x_pad = _pad2d(x, p, p)
    slab = pack_params(params, p)

    vmem = pl.BlockSpec(memory_space=pltpu.MemorySpace.VMEM)
    out = pl.pallas_call(
        gcn_kernel,
        out_shape=jax.ShapeDtypeStruct((p, p), jnp.float32),
        in_specs=[vmem, vmem, vmem],
        out_specs=vmem,
    )(a_pad, x_pad, slab)

    y3 = out[:n, :hid]
    logits = out[:n, hid:hid + num_classes]
    return logits, y3


def build_norm_adj(edge_index, num_nodes):
    """PyG GCNConv normalization: D^{-1/2} (A + I) D^{-1/2} (dense)."""
    # TODO(synk): assumes 0/1 adjacency and no pre-existing self-loops in
    # edge_index (matches this synthetic graph and KarateClub).
    src, dst = edge_index[0], edge_index[1]
    a = jnp.zeros((num_nodes, num_nodes), jnp.float32).at[src, dst].set(1.0)
    diag = jnp.arange(num_nodes)
    a = a.at[diag, diag].set(1.0)  # add self-loops
    deg = a.sum(axis=1)
    d_inv_sqrt = jnp.where(deg > 0, jax.lax.rsqrt(deg), 0.0)  # guard deg=0
    return a * d_inv_sqrt[:, None] * d_inv_sqrt[None, :]


def reference_forward(a_hat, x, params):
    w1, b1, w2, b2, w3, b3, wc, bc = params
    h = jnp.maximum(a_hat @ (x @ w1) + b1, 0.0)
    h = jnp.maximum(a_hat @ (h @ w2) + b2, 0.0)
    y3 = jnp.maximum(a_hat @ (h @ w3) + b3, 0.0)
    return y3 @ wc + bc, y3


if __name__ == "__main__":
    # KarateClub: 34 nodes, 34 features (one-hot), 4 classes.
    N, F, C = 34, 34, 4

    # Deterministic synthetic undirected graph: ring + chord edges (no dups / self-loops).
    idx = jnp.arange(N, dtype=jnp.int32)
    src = jnp.concatenate([idx, (idx + 1) % N, idx, (idx + 3) % N])
    dst = jnp.concatenate([(idx + 1) % N, idx, (idx + 3) % N, idx])
    edge_index = jnp.stack([src, dst])

    key = jax.random.PRNGKey(0)
    kx, k1, k2, k3, k4, k5, k6, k7, k8 = jax.random.split(key, 9)

    x = jax.random.normal(kx, (N, F), jnp.float32)

    # GCNConv lin weights + post-aggregation biases, then nn.Linear(2, C).
    w1 = jax.random.normal(k1, (F, 4), jnp.float32) * 0.1
    b1 = jax.random.normal(k2, (1, 4), jnp.float32) * 0.1
    w2 = jax.random.normal(k3, (4, 4), jnp.float32) * 0.1
    b2 = jax.random.normal(k4, (1, 4), jnp.float32) * 0.1
    w3 = jax.random.normal(k5, (4, 2), jnp.float32) * 0.1
    b3 = jax.random.normal(k6, (1, 2), jnp.float32) * 0.1
    wc = jax.random.normal(k7, (2, C), jnp.float32) * 0.1
    bc = jax.random.normal(k8, (1, C), jnp.float32) * 0.1
    params = (w1, b1, w2, b2, w3, b3, wc, bc)

    a_hat = build_norm_adj(edge_index, N)

    out, y3 = jax.jit(gcn_forward)(a_hat, x, params)
    jax.block_until_ready((out, y3))

    ref_out, ref_y3 = reference_forward(a_hat, x, params)
    assert out.shape == (N, C) and y3.shape == (N, 2)
    assert jnp.allclose(out, ref_out, atol=1e-4, rtol=1e-4)
    assert jnp.allclose(y3, ref_y3, atol=1e-4, rtol=1e-4)

    print("KERNEL_OK")
</pallas_src>

<mosaic_0001>
module attributes {stable_mosaic.version = 11 : i64} {
  func.func @gcn_kernel(%arg0: memref<128x128xf32, #tpu.memory_space<vmem>>, %arg1: memref<128x128xf32, #tpu.memory_space<vmem>>, %arg2: memref<520x128xf32, #tpu.memory_space<vmem>>, %arg3: memref<128x128xf32, #tpu.memory_space<vmem>>) attributes {dimension_semantics = [], scalar_prefetch = 0 : i64, scratch_operands = 0 : i64, tpu.core_type = #tpu.core_type<tc>} {
    %c0 = arith.constant 0 : index
    %c0_0 = arith.constant 0 : index
    %0 = vector.load %arg0[%c0, %c0_0] : memref<128x128xf32, #tpu.memory_space<vmem>>, vector<128x128xf32>
    %c0_1 = arith.constant 0 : index
    %c0_2 = arith.constant 0 : index
    %1 = vector.load %arg1[%c0_1, %c0_2] : memref<128x128xf32, #tpu.memory_space<vmem>>, vector<128x128xf32>
    %c0_3 = arith.constant 0 : index
    %c0_4 = arith.constant 0 : index
    %2 = vector.load %arg2[%c0_3, %c0_4] : memref<520x128xf32, #tpu.memory_space<vmem>>, vector<128x128xf32>
    %c128 = arith.constant 128 : index
    %c0_5 = arith.constant 0 : index
    %3 = vector.load %arg2[%c128, %c0_5] : memref<520x128xf32, #tpu.memory_space<vmem>>, vector<128x128xf32>
    %c256 = arith.constant 256 : index
    %c0_6 = arith.constant 0 : index
    %4 = vector.load %arg2[%c256, %c0_6] : memref<520x128xf32, #tpu.memory_space<vmem>>, vector<128x128xf32>
    %c384 = arith.constant 384 : index
    %c0_7 = arith.constant 0 : index
    %5 = vector.load %arg2[%c384, %c0_7] : memref<520x128xf32, #tpu.memory_space<vmem>>, vector<128x128xf32>
    %c512 = arith.constant 512 : index
    %c0_8 = arith.constant 0 : index
    %6 = vector.load %arg2[%c512, %c0_8] : memref<520x128xf32, #tpu.memory_space<vmem>>, vector<8x128xf32>
    %7 = vector.extract_strided_slice %6 {offsets = [0, 0], sizes = [1, 128], strides = [1, 1]} : vector<8x128xf32> to vector<1x128xf32>
    %8 = vector.extract_strided_slice %6 {offsets = [1, 0], sizes = [1, 128], strides = [1, 1]} : vector<8x128xf32> to vector<1x128xf32>
    %9 = vector.extract_strided_slice %6 {offsets = [2, 0], sizes = [1, 128], strides = [1, 1]} : vector<8x128xf32> to vector<1x128xf32>
    %10 = vector.extract_strided_slice %6 {offsets = [3, 0], sizes = [1, 128], strides = [1, 1]} : vector<8x128xf32> to vector<1x128xf32>
    %cst = arith.constant dense<0.000000e+00> : vector<128x128xf32>
    %11 = tpu.matmul %1, %2, %cst {dimension_numbers = #tpu.dot_dimension_numbers<[1], [0], [0], [1], [0, 0, 1, 1], [], []>} : vector<128x128xf32>, vector<128x128xf32>, vector<128x128xf32> -> vector<128x128xf32>
    %cst_9 = arith.constant dense<0.000000e+00> : vector<128x128xf32>
    %12 = tpu.matmul %0, %11, %cst_9 {dimension_numbers = #tpu.dot_dimension_numbers<[1], [0], [0], [1], [0, 0, 1, 1], [], []>} : vector<128x128xf32>, vector<128x128xf32>, vector<128x128xf32> -> vector<128x128xf32>
    %13 = vector.broadcast %7 : vector<1x128xf32> to vector<128x128xf32>
    %14 = arith.addf %12, %13 : vector<128x128xf32>
    %cst_10 = arith.constant 0.000000e+00 : f32
    %15 = vector.broadcast %cst_10 : f32 to vector<128x128xf32>
    %16 = arith.maximumf %14, %15 : vector<128x128xf32>
    %cst_11 = arith.constant dense<0.000000e+00> : vector<128x128xf32>
    %17 = tpu.matmul %16, %3, %cst_11 {dimension_numbers = #tpu.dot_dimension_numbers<[1], [0], [0], [1], [0, 0, 1, 1], [], []>} : vector<128x128xf32>, vector<128x128xf32>, vector<128x128xf32> -> vector<128x128xf32>
    %cst_12 = arith.constant dense<0.000000e+00> : vector<128x128xf32>
    %18 = tpu.matmul %0, %17, %cst_12 {dimension_numbers = #tpu.dot_dimension_numbers<[1], [0], [0], [1], [0, 0, 1, 1], [], []>} : vector<128x128xf32>, vector<128x128xf32>, vector<128x128xf32> -> vector<128x128xf32>
    %19 = vector.broadcast %8 : vector<1x128xf32> to vector<128x128xf32>
    %20 = arith.addf %18, %19 : vector<128x128xf32>
    %cst_13 = arith.constant 0.000000e+00 : f32
    %21 = vector.broadcast %cst_13 : f32 to vector<128x128xf32>
    %22 = arith.maximumf %20, %21 : vector<128x128xf32>
    %cst_14 = arith.constant dense<0.000000e+00> : vector<128x128xf32>
    %23 = tpu.matmul %22, %4, %cst_14 {dimension_numbers = #tpu.dot_dimension_numbers<[1], [0], [0], [1], [0, 0, 1, 1], [], []>} : vector<128x128xf32>, vector<128x128xf32>, vector<128x128xf32> -> vector<128x128xf32>
    %cst_15 = arith.constant dense<0.000000e+00> : vector<128x128xf32>
    %24 = tpu.matmul %0, %23, %cst_15 {dimension_numbers = #tpu.dot_dimension_numbers<[1], [0], [0], [1], [0, 0, 1, 1], [], []>} : vector<128x128xf32>, vector<128x128xf32>, vector<128x128xf32> -> vector<128x128xf32>
    %25 = vector.broadcast %9 : vector<1x128xf32> to vector<128x128xf32>
    %26 = arith.addf %24, %25 : vector<128x128xf32>
    %cst_16 = arith.constant 0.000000e+00 : f32
    %27 = vector.broadcast %cst_16 : f32 to vector<128x128xf32>
    %28 = arith.maximumf %26, %27 : vector<128x128xf32>
    %cst_17 = arith.constant dense<0.000000e+00> : vector<128x128xf32>
    %29 = tpu.matmul %28, %5, %cst_17 {dimension_numbers = #tpu.dot_dimension_numbers<[1], [0], [0], [1], [0, 0, 1, 1], [], []>} : vector<128x128xf32>, vector<128x128xf32>, vector<128x128xf32> -> vector<128x128xf32>
    %30 = arith.addf %28, %29 : vector<128x128xf32>
    %31 = vector.broadcast %10 : vector<1x128xf32> to vector<128x128xf32>
    %32 = arith.addf %30, %31 : vector<128x128xf32>
    %c0_18 = arith.constant 0 : index
    %c0_19 = arith.constant 0 : index
    %33 = vector.load %arg3[%c0_18, %c0_19] : memref<128x128xf32, #tpu.memory_space<vmem>>, vector<128x128xf32>
    tpu.vector_store %arg3[%c0_18, %c0_19], %32 {strides = array<i32>} : memref<128x128xf32, #tpu.memory_space<vmem>>, vector<128x128xf32>,
    return
  }
}

</mosaic_0001>

<bundles_post_ra>
// kernel: gcn_forward.1
= control target key start
LH: loop header
LB: loop body
LE: loop exit
PB: predicated region body
PF: predicated region fallthrough
CT: control target
= control target key end

     0   :  { %s2689_s2 = inlined_call_operand.vmem [shape: f32[520,128], index: 2, kind: input, shape index: {}]   ;;  %s2690_s1 = inlined_call_operand.vmem [shape: f32[128,128], index: 1, kind: input, shape index: {}]   ;;  %s2691_s0 = inlined_call_operand.vmem [shape: f32[128,128], index: 0, kind: input, shape index: {}]   ;;  %s2692_s3 = inlined_call_operand.vmem [shape: f32[128,128], index: 3, kind: output, shape index: {}]  }
   0x1   :  { %v46_v0 = vld [vmem:[%s2689_s2] sm:$0xff]  ;;  %v47_v1 = vld [vmem:[%s2689_s2 + $0x8] sm:$0xff]  ;;  %v48_v2 = vld [vmem:[%s2689_s2 + $0x10] sm:$0xff] }
   0x2   :  { %v1858_v3 = vpack.c.bf16 %v47_v1, %v46_v0  ;;  %v49_v4 = vld [vmem:[%s2689_s2 + $0x18] sm:$0xff]  ;;  %v50_v6 = vld [vmem:[%s2689_s2 + $0x20] sm:$0xff]  ;;  %v51_v7 = vld [vmem:[%s2689_s2 + $0x28] sm:$0xff] }
   0x3   :  { %v1862_v5 = vpack.c.bf16 %v49_v4, %v48_v2  ;;  %v1866_v8 = vpack.c.bf16 %v51_v7, %v50_v6  ;;  %v30_v9 = vld [vmem:[%s2690_s1] sm:$0xff]  ;;  %v52_v10 = vld [vmem:[%s2689_s2 + $0x30] sm:$0xff]  ;;  %v53_v11 = vld [vmem:[%s2689_s2 + $0x38] sm:$0xff] }
   0x4   :  { %1859 = vmatprep.subr.bf16.mxu0 %v1858_v3  ;;  %1498 = vmatprep.mubr.f32.mxu0 %v30_v9  ;;  %v1870_v12 = vpack.c.bf16 %v53_v11, %v52_v10  ;;  %v54_v13 = vld [vmem:[%s2689_s2 + $0x40] sm:$0xff]  ;;  %v55_v14 = vld [vmem:[%s2689_s2 + $0x48] sm:$0xff]  ;;  %v56_v16 = vld [vmem:[%s2689_s2 + $0x50] sm:$0xff] }
   0x5   :  { %1861 = vmatpush3.bf16.msra.mxu0 %v1858_v3  ;;  %v1874_v15 = vpack.c.bf16 %v55_v14, %v54_v13  ;;  %v57_v17 = vld [vmem:[%s2689_s2 + $0x58] sm:$0xff]  ;;  %v58_v19 = vld [vmem:[%s2689_s2 + $0x60] sm:$0xff]  ;;  %v59_v20 = vld [vmem:[%s2689_s2 + $0x68] sm:$0xff] }
   0x6   :  { %1863 = vmatprep.subr.bf16.mxu0 %v1862_v5  ;;  %v1878_v18 = vpack.c.bf16 %v57_v17, %v56_v16  ;;  %v1882_v21 = vpack.c.bf16 %v59_v20, %v58_v19  ;;  %v60_v22 = vld [vmem:[%s2689_s2 + $0x70] sm:$0xff]  ;;  %v61_v23 = vld [vmem:[%s2689_s2 + $0x78] sm:$0xff]  ;;  %v31_v25 = vld [vmem:[%s2690_s1 + $0x8] sm:$0xff] }
   0x7   :  { %v1886_v24 = vpack.c.bf16 %v61_v23, %v60_v22  ;;  %v32_v26 = vld [vmem:[%s2690_s1 + $0x10] sm:$0xff]  ;;  %v33_v27 = vld [vmem:[%s2690_s1 + $0x18] sm:$0xff]  ;;  %v34_v28 = vld [vmem:[%s2690_s1 + $0x20] sm:$0xff] }
   0x8   :  { %v35_v29 = vld [vmem:[%s2690_s1 + $0x28] sm:$0xff]  ;;  %v36_v30 = vld [vmem:[%s2690_s1 + $0x30] sm:$0xff]  ;;  %v37_v31 = vld [vmem:[%s2690_s1 + $0x38] sm:$0xff] }
   0x9   :  { %1865 = vmatpush3.bf16.msra.mxu0 %v1862_v5  ;;  %v38_v32 = vld [vmem:[%s2690_s1 + $0x40] sm:$0xff]  ;;  %v39_v33 = vld [vmem:[%s2690_s1 + $0x48] sm:$0xff]  ;;  %v40_v34 = vld [vmem:[%s2690_s1 + $0x50] sm:$0xff] }
   0xa   :  { %1867 = vmatprep.subr.bf16.mxu0 %v1866_v8  ;;  %v41_v35 = vld [vmem:[%s2690_s1 + $0x58] sm:$0xff]  ;;  %v42_v36 = vld [vmem:[%s2690_s1 + $0x60] sm:$0xff]  ;;  %v43_v37 = vld [vmem:[%s2690_s1 + $0x68] sm:$0xff] }
   0xb   :  { %v44_v38 = vld [vmem:[%s2690_s1 + $0x70] sm:$0xff]  ;;  %v45_v39 = vld [vmem:[%s2690_s1 + $0x78] sm:$0xff]  ;;  %v2217_v40 = vld [vmem:[%s2691_s0] sm:$0xff] }
   0xc   :  { %1554 = vmatprep.mubr.f32.mxu1 %v2217_v40  ;;  %v62_v41 = vld [vmem:[%s2689_s2 + $0x80] sm:$0xff]  ;;  %v63_v42 = vld [vmem:[%s2689_s2 + $0x88] sm:$0xff]  ;;  %v64_v43 = vld [vmem:[%s2689_s2 + $0x90] sm:$0xff] }
   0xd   :  { %1869 = vmatpush3.bf16.msra.mxu0 %v1866_v8  ;;  %v1922_v44 = vpack.c.bf16 %v63_v42, %v62_v41  ;;  %v65_v45 = vld [vmem:[%s2689_s2 + $0x98] sm:$0xff]  ;;  %v66_v47 = vld [vmem:[%s2689_s2 + $0xa0] sm:$0xff]  ;;  %v67_v48 = vld [vmem:[%s2689_s2 + $0xa8] sm:$0xff]  ;;  %v256_v41 = vlaneseq }
   0xe   :  { %1871 = vmatprep.subr.bf16.mxu0 %v1870_v12  ;;  %v1926_v46 = vpack.c.bf16 %v65_v45, %v64_v43  ;;  %v1930_v49 = vpack.c.bf16 %v67_v48, %v66_v47  ;;  %v68_v50 = vld [vmem:[%s2689_s2 + $0xb0] sm:$0xff]  ;;  %v69_v51 = vld [vmem:[%s2689_s2 + $0xb8] sm:$0xff]  ;;  %v70_v53 = vld [vmem:[%s2689_s2 + $0xc0] sm:$0xff] }
   0xf   :  { %v1934_v52 = vpack.c.bf16 %v69_v51, %v68_v50  ;;  %v71_v54 = vld [vmem:[%s2689_s2 + $0xc8] sm:$0xff]  ;;  %v72_v56 = vld [vmem:[%s2689_s2 + $0xd0] sm:$0xff]  ;;  %v73_v57 = vld [vmem:[%s2689_s2 + $0xd8] sm:$0xff]  ;;  %v2359_v42 = vshrl.u32 %v256_v41, 7 }
  0x10   :  { %v1938_v55 = vpack.c.bf16 %v71_v54, %v70_v53  ;;  %v1942_v58 = vpack.c.bf16 %v73_v57, %v72_v56  ;;  %v74_v59 = vld [vmem:[%s2689_s2 + $0xe0] sm:$0xff]  ;;  %v75_v60 = vld [vmem:[%s2689_s2 + $0xe8] sm:$0xff]  ;;  %v2270_v23 = vld [vmem:[%s2691_s0 + $0x10] sm:$0xff] }
  0x11   :  { %1873 = vmatpush3.bf16.msra.mxu0 %v1870_v12  ;;  %v1946_v61 = vpack.c.bf16 %v75_v60, %v74_v59  ;;  %v2265_v22 = vld [vmem:[%s2691_s0 + $0x8] sm:$0xff]  ;;  %v258_v43 = vsub.s32 0, %v2359_v42 }
  0x12   :  { %1875 = vmatprep.subr.bf16.mxu0 %v1874_v15 }
  0x15   :  { %1877 = vmatpush3.bf16.msra.mxu0 %v1874_v15 }
  0x16   :  { %1879 = vmatprep.subr.bf16.mxu0 %v1878_v18 }
  0x19   :  { %1881 = vmatpush3.bf16.msra.mxu0 %v1878_v18 }
  0x1a   :  { %1883 = vmatprep.subr.bf16.mxu0 %v1882_v21 }
  0x1d   :  { %1885 = vmatpush3.bf16.msra.mxu0 %v1882_v21 }
  0x1e   :  { %1887 = vmatprep.subr.bf16.mxu0 %v1886_v24 }
  0x21   :  { %1889 = vmatpush3.bf16.msra.mxu0 %v1886_v24  ;;  %v2277_v24 = vld [vmem:[%s2691_s0 + $0x18] sm:$0xff] }
  0x22   :  { %1923 = vmatprep.subr.bf16.mxu0 %v1922_v44 }
  0x24   :  { %1499 = vmatmul.mubr.f32.vlgmr.msra.gmra.mrb[0].mxu0 %v31_v25  ;;  %v2282_v25 = vld [vmem:[%s2691_s0 + $0x20] sm:$0xff] }
  0x25   :  { %1501 = vmatprep.mubr.f32.mxu0 %v32_v26  ;;  %1925 = vmatpush3.bf16.msra.mxu0 %v1922_v44  ;;  %v2289_v26 = vld [vmem:[%s2691_s0 + $0x28] sm:$0xff]  ;;  %v2365_v44 = vld [vmem:[%s2689_s2 + $0x200] sm:$0xff] }
  0x26   :  { %1927 = vmatprep.subr.bf16.mxu0 %v1926_v46  ;;  %v259_v45 = vrot.slane %v2365_v44, %v258_v43 }
  0x28   :  { %1502 = vmatmul.mubr.f32.gmra.mrb[2].mxu0 %v33_v27  ;;  %v2294_v27 = vld [vmem:[%s2691_s0 + $0x30] sm:$0xff] }
  0x29   :  { %1504 = vmatprep.mubr.f32.mxu0 %v34_v28  ;;  %1929 = vmatpush3.bf16.msra.mxu0 %v1926_v46  ;;  %v2301_v28 = vld [vmem:[%s2691_s0 + $0x38] sm:$0xff] }
  0x2a   :  { %1931 = vmatprep.subr.bf16.mxu0 %v1930_v49 }
  0x2c   :  { %1505 = vmatmul.mubr.f32.gmra.mrb[4].mxu0 %v35_v29  ;;  %v2306_v29 = vld [vmem:[%s2691_s0 + $0x40] sm:$0xff] }
  0x2d   :  { %1507 = vmatprep.mubr.f32.mxu0 %v36_v30  ;;  %1933 = vmatpush3.bf16.msra.mxu0 %v1930_v49  ;;  %v2313_v30 = vld [vmem:[%s2691_s0 + $0x48] sm:$0xff] }
  0x2e   :  { %1935 = vmatprep.subr.bf16.mxu0 %v1934_v52 }
  0x30   :  { %1508 = vmatmul.mubr.f32.gmra.mrb[6].mxu0 %v37_v31  ;;  %v2318_v31 = vld [vmem:[%s2691_s0 + $0x50] sm:$0xff] }
  0x31   :  { %1510 = vmatprep.mubr.f32.mxu0 %v38_v32  ;;  %1937 = vmatpush3.bf16.msra.mxu0 %v1934_v52  ;;  %v2325_v32 = vld [vmem:[%s2691_s0 + $0x58] sm:$0xff] }
  0x32   :  { %1939 = vmatprep.subr.bf16.mxu0 %v1938_v55 }
  0x34   :  { %1511 = vmatmul.mubr.f32.gmra.mrb[8].mxu0 %v39_v33  ;;  %v2330_v33 = vld [vmem:[%s2691_s0 + $0x60] sm:$0xff] }
  0x35   :  { %1513 = vmatprep.mubr.f32.mxu0 %v40_v34  ;;  %1941 = vmatpush3.bf16.msra.mxu0 %v1938_v55  ;;  %v2337_v34 = vld [vmem:[%s2691_s0 + $0x68] sm:$0xff] }
  0x36   :  { %1943 = vmatprep.subr.bf16.mxu0 %v1942_v58 }
  0x38   :  { %1514 = vmatmul.mubr.f32.gmra.mrb[10].mxu0 %v41_v35  ;;  %v2342_v35 = vld [vmem:[%s2691_s0 + $0x70] sm:$0xff] }
  0x39   :  { %1516 = vmatprep.mubr.f32.mxu0 %v42_v36  ;;  %1945 = vmatpush3.bf16.msra.mxu0 %v1942_v58  ;;  %v2349_v36 = vld [vmem:[%s2691_s0 + $0x78] sm:$0xff] }
  0x3a   :  { %1947 = vmatprep.subr.bf16.mxu0 %v1946_v61 }
  0x3c   :  { %1517 = vmatmul.mubr.f32.gmra.mrb[12].mxu0 %v43_v37  ;;  %v76_v37 = vld [vmem:[%s2689_s2 + $0xf0] sm:$0xff] }
  0x3d   :  { %1519 = vmatprep.mubr.f32.mxu0 %v44_v38  ;;  %1949 = vmatpush3.bf16.msra.mxu0 %v1946_v61  ;;  %v77_v38 = vld [vmem:[%s2689_s2 + $0xf8] sm:$0xff] }
  0x40   :  { %1520 = vmatmul.mubr.f32.gmra.mrb[14].mxu0 %v45_v39  ;;  %v1950_v39 = vpack.c.bf16 %v77_v38, %v76_v37 }
  0x42   :  { %1951 = vmatprep.subr.bf16.mxu0 %v1950_v39 }
  0x43   :  { %1953 = vmatpush3.bf16.msra.mxu0 %v1950_v39 }
  0xf7   :  { %v1500_v62 = vpop.f32.mrb[0].mxu0 }
  0xf8   :  { %v177_v63 = vpop.f32.mrb[1].mxu0 }
  0xf9   :  { %v1890_v0 = vpack.c.bf16 %v1500_v62, %v177_v63 }
  0xfb   :  { %v1503_v1 = vpop.f32.mrb[2].mxu0  ;;  %1891 = vmatprep.subr.bf16.mxu1 %v1890_v0 }
  0xfc   :  { %v187_v2 = vpop.f32.mrb[3].mxu0  ;;  %1893 = vmatpush3.bf16.msra.mxu1 %v1890_v0 }
  0xfd   :  { %v1894_v3 = vpack.c.bf16 %v1503_v1, %v187_v2 }
  0xff   :  { %v1506_v4 = vpop.f32.mrb[4].mxu0  ;;  %1895 = vmatprep.subr.bf16.mxu1 %v1894_v3 }
 0x100   :  { %v197_v5 = vpop.f32.mrb[5].mxu0  ;;  %1897 = vmatpush3.bf16.msra.mxu1 %v1894_v3 }
 0x101   :  { %v1898_v6 = vpack.c.bf16 %v1506_v4, %v197_v5 }
 0x103   :  { %v1509_v7 = vpop.f32.mrb[6].mxu0  ;;  %1899 = vmatprep.subr.bf16.mxu1 %v1898_v6 }
 0x104   :  { %v207_v8 = vpop.f32.mrb[7].mxu0  ;;  %1901 = vmatpush3.bf16.msra.mxu1 %v1898_v6 }
 0x105   :  { %v1902_v9 = vpack.c.bf16 %v1509_v7, %v207_v8 }
 0x107   :  { %v1512_v10 = vpop.f32.mrb[8].mxu0  ;;  %1903 = vmatprep.subr.bf16.mxu1 %v1902_v9 }
 0x108   :  { %v217_v11 = vpop.f32.mrb[9].mxu0  ;;  %1905 = vmatpush3.bf16.msra.mxu1 %v1902_v9 }
 0x109   :  { %v1906_v12 = vpack.c.bf16 %v1512_v10, %v217_v11 }
 0x10b   :  { %v1515_v13 = vpop.f32.mrb[10].mxu0  ;;  %1907 = vmatprep.subr.bf16.mxu1 %v1906_v12 }
 0x10c   :  { %v227_v14 = vpop.f32.mrb[11].mxu0  ;;  %1909 = vmatpush3.bf16.msra.mxu1 %v1906_v12 }
 0x10d   :  { %v1910_v15 = vpack.c.bf16 %v1515_v13, %v227_v14 }
 0x10f   :  { %v1518_v16 = vpop.f32.mrb[12].mxu0  ;;  %1911 = vmatprep.subr.bf16.mxu1 %v1910_v15 }
 0x110   :  { %v237_v17 = vpop.f32.mrb[13].mxu0  ;;  %1913 = vmatpush3.bf16.msra.mxu1 %v1910_v15 }
 0x111   :  { %v1914_v18 = vpack.c.bf16 %v1518_v16, %v237_v17 }
 0x113   :  { %v1521_v19 = vpop.f32.mrb[14].mxu0  ;;  %1915 = vmatprep.subr.bf16.mxu1 %v1914_v18 }
 0x114   :  { %v247_v20 = vpop.f32.mrb[15].mxu0  ;;  %1917 = vmatpush3.bf16.msra.mxu1 %v1914_v18 }
 0x115   :  { %v1918_v21 = vpack.c.bf16 %v1521_v19, %v247_v20 }
 0x117   :  { %1919 = vmatprep.subr.bf16.mxu1 %v1918_v21 }
 0x118   :  { %1921 = vmatpush3.bf16.msra.mxu1 %v1918_v21 }
 0x11b   :  { %1555 = vmatmul.mubr.f32.vlgmr.msra.gmra.mrb[0].mxu1 %v2265_v22 }
 0x11c   :  { %1557 = vmatprep.mubr.f32.mxu1 %v2270_v23 }
 0x11f   :  { %1558 = vmatmul.mubr.f32.gmra.mrb[2].mxu1 %v2277_v24 }
 0x120   :  { %1560 = vmatprep.mubr.f32.mxu1 %v2282_v25 }
 0x123   :  { %1561 = vmatmul.mubr.f32.gmra.mrb[4].mxu1 %v2289_v26 }
 0x124   :  { %1563 = vmatprep.mubr.f32.mxu1 %v2294_v27 }
 0x127   :  { %1564 = vmatmul.mubr.f32.gmra.mrb[6].mxu1 %v2301_v28 }
 0x128   :  { %1566 = vmatprep.mubr.f32.mxu1 %v2306_v29 }
 0x12b   :  { %1567 = vmatmul.mubr.f32.gmra.mrb[8].mxu1 %v2313_v30 }
 0x12c   :  { %1569 = vmatprep.mubr.f32.mxu1 %v2318_v31 }
 0x12f   :  { %1570 = vmatmul.mubr.f32.gmra.mrb[10].mxu1 %v2325_v32 }
 0x130   :  { %1572 = vmatprep.mubr.f32.mxu1 %v2330_v33 }
 0x133   :  { %1573 = vmatmul.mubr.f32.gmra.mrb[12].mxu1 %v2337_v34 }
 0x134   :  { %1575 = vmatprep.mubr.f32.mxu1 %v2342_v35 }
 0x137   :  { %1576 = vmatmul.mubr.f32.gmra.mrb[14].mxu1 %v2349_v36 }
 0x138   :  { %1666 = vmatprep.mubr.f32.mxu1 %v2217_v40 }
 0x1ee   :  { %v1556_v46 = vpop.f32.mrb[0].mxu1 }
 0x1ef   :  { %v332_v47 = vadd.f32 %v1556_v46, %v259_v45  ;;  %v326_v48 = vpop.f32.mrb[1].mxu1 }
 0x1f0   :  { %v327_v49 = vadd.f32 %v326_v48, %v259_v45 }
 0x1f1   :  { %v406_v52 = vmax.f32 %v332_v47, 0.0 }
 0x1f2   :  { %v405_v50 = vmax.f32 %v327_v49, 0.0  ;;  %v1559_v51 = vpop.f32.mrb[2].mxu1  ;;  %v78_v49 = vld [vmem:[%s2689_s2 + $0x100] sm:$0xff] }
 0x1f3   :  { %v342_v53 = vadd.f32 %v1559_v51, %v259_v45  ;;  %v336_v54 = vpop.f32.mrb[3].mxu1  ;;  %v80_v51 = vld [vmem:[%s2689_s2 + $0x110] sm:$0xff] }
 0x1f4   :  { %v337_v55 = vadd.f32 %v336_v54, %v259_v45  ;;  %1610 = vmatprep.mubr.f32.mxu0 %v405_v50  ;;  %v79_v50 = vld [vmem:[%s2689_s2 + $0x108] sm:$0xff]  ;;  %v82_v54 = vld [vmem:[%s2689_s2 + $0x120] sm:$0xff] }
 0x1f5   :  { %1611 = vmatmul.mubr.f32.vlgmr.msra.gmra.mrb[16].mxu0 %v406_v52  ;;  %v408_v58 = vmax.f32 %v342_v53, 0.0  ;;  %v1986_v52 = vpack.c.bf16 %v79_v50, %v78_v49  ;;  %v93_v49 = vld [vmem:[%s2689_s2 + $0x178] sm:$0xff] }
 0x1f6   :  { %v407_v56 = vmax.f32 %v337_v55, 0.0  ;;  %v1562_v57 = vpop.f32.mrb[4].mxu1  ;;  %v83_v55 = vld [vmem:[%s2689_s2 + $0x128] sm:$0xff] }
 0x1f7   :  { %v352_v59 = vadd.f32 %v1562_v57, %v259_v45  ;;  %v346_v60 = vpop.f32.mrb[5].mxu1  ;;  %1987 = vmatprep.subr.bf16.mxu0 %v1986_v52  ;;  %v84_v57 = vld [vmem:[%s2689_s2 + $0x130] sm:$0xff] }
 0x1f8   :  { %v347_v61 = vadd.f32 %v346_v60, %v259_v45  ;;  %1613 = vmatprep.mubr.f32.mxu0 %v407_v56  ;;  %1989 = vmatpush3.bf16.msra.mxu0 %v1986_v52  ;;  %v1994_v56 = vpack.c.bf16 %v83_v55, %v82_v54  ;;  %v86_v60 = vld [vmem:[%s2689_s2 + $0x140] sm:$0xff] }
 0x1f9   :  { %1614 = vmatmul.mubr.f32.gmra.mrb[18].mxu0 %v408_v58  ;;  %v410_v0 = vmax.f32 %v352_v59, 0.0  ;;  %v85_v58 = vld [vmem:[%s2689_s2 + $0x138] sm:$0xff] }
 0x1fa   :  { %v409_v62 = vmax.f32 %v347_v61, 0.0  ;;  %v1565_v63 = vpop.f32.mrb[6].mxu1  ;;  %v1998_v59 = vpack.c.bf16 %v85_v58, %v84_v57  ;;  %v87_v61 = vld [vmem:[%s2689_s2 + $0x148] sm:$0xff] }
 0x1fb   :  { %v362_v1 = vadd.f32 %v1565_v63, %v259_v45  ;;  %v356_v2 = vpop.f32.mrb[7].mxu1  ;;  %v88_v63 = vld [vmem:[%s2689_s2 + $0x150] sm:$0xff] }
 0x1fc   :  { %v357_v3 = vadd.f32 %v356_v2, %v259_v45  ;;  %1616 = vmatprep.mubr.f32.mxu0 %v409_v62  ;;  %v2002_v62 = vpack.c.bf16 %v87_v61, %v86_v60  ;;  %v90_v2 = vld [vmem:[%s2689_s2 + $0x160] sm:$0xff] }
 0x1fd   :  { %1617 = vmatmul.mubr.f32.gmra.mrb[20].mxu0 %v410_v0  ;;  %v412_v6 = vmax.f32 %v362_v1, 0.0  ;;  %v89_v0 = vld [vmem:[%s2689_s2 + $0x158] sm:$0xff] }
 0x1fe   :  { %v411_v4 = vmax.f32 %v357_v3, 0.0  ;;  %v1568_v5 = vpop.f32.mrb[8].mxu1  ;;  %v2006_v1 = vpack.c.bf16 %v89_v0, %v88_v63  ;;  %v91_v3 = vld [vmem:[%s2689_s2 + $0x168] sm:$0xff] }
 0x1ff   :  { %v372_v7 = vadd.f32 %v1568_v5, %v259_v45  ;;  %v366_v8 = vpop.f32.mrb[9].mxu1 }
 0x200   :  { %v367_v9 = vadd.f32 %v366_v8, %v259_v45  ;;  %1619 = vmatprep.mubr.f32.mxu0 %v411_v4  ;;  %v2010_v4 = vpack.c.bf16 %v91_v3, %v90_v2 }
 0x201   :  { %1620 = vmatmul.mubr.f32.gmra.mrb[22].mxu0 %v412_v6  ;;  %v414_v12 = vmax.f32 %v372_v7, 0.0 }
 0x202   :  { %v413_v10 = vmax.f32 %v367_v9, 0.0  ;;  %v1571_v11 = vpop.f32.mrb[10].mxu1 }
 0x203   :  { %v382_v13 = vadd.f32 %v1571_v11, %v259_v45  ;;  %v376_v14 = vpop.f32.mrb[11].mxu1 }
 0x204   :  { %v377_v15 = vadd.f32 %v376_v14, %v259_v45  ;;  %1622 = vmatprep.mubr.f32.mxu0 %v413_v10 }
 0x205   :  { %1623 = vmatmul.mubr.f32.gmra.mrb[24].mxu0 %v414_v12  ;;  %v416_v18 = vmax.f32 %v382_v13, 0.0 }
 0x206   :  { %v415_v16 = vmax.f32 %v377_v15, 0.0  ;;  %v1574_v17 = vpop.f32.mrb[12].mxu1 }
 0x207   :  { %v392_v19 = vadd.f32 %v1574_v17, %v259_v45  ;;  %v386_v20 = vpop.f32.mrb[13].mxu1 }
 0x208   :  { %v387_v21 = vadd.f32 %v386_v20, %v259_v45  ;;  %1625 = vmatprep.mubr.f32.mxu0 %v415_v16 }
 0x209   :  { %1626 = vmatmul.mubr.f32.gmra.mrb[26].mxu0 %v416_v18  ;;  %v418_v39 = vmax.f32 %v392_v19, 0.0 }
 0x20a   :  { %v417_v37 = vmax.f32 %v387_v21, 0.0  ;;  %v1577_v38 = vpop.f32.mrb[14].mxu1 }
 0x20b   :  { %v402_v41 = vadd.f32 %v1577_v38, %v259_v45  ;;  %v396_v43 = vpop.f32.mrb[15].mxu1 }
 0x20c   :  { %v397_v46 = vadd.f32 %v396_v43, %v259_v45  ;;  %1628 = vmatprep.mubr.f32.mxu0 %v417_v37  ;;  %v81_v45 = vld [vmem:[%s2689_s2 + $0x118] sm:$0xff] }
 0x20d   :  { %1629 = vmatmul.mubr.f32.gmra.mrb[28].mxu0 %v418_v39  ;;  %v420_v48 = vmax.f32 %v402_v41, 0.0  ;;  %v1990_v53 = vpack.c.bf16 %v81_v45, %v80_v51  ;;  %v568_v51 = vsub.s32 1, %v2359_v42 }
 0x20e   :  { %v419_v47 = vmax.f32 %v397_v46, 0.0 }
 0x20f   :  { %1991 = vmatprep.subr.bf16.mxu0 %v1990_v53  ;;  %v569_v52 = vrot.slane %v2365_v44, %v568_v51 }
 0x210   :  { %1631 = vmatprep.mubr.f32.mxu0 %v419_v47  ;;  %1993 = vmatpush3.bf16.msra.mxu0 %v1990_v53 }
 0x211   :  { %1632 = vmatmul.mubr.f32.gmra.mrb[30].mxu0 %v420_v48  ;;  %1995 = vmatprep.subr.bf16.mxu0 %v1994_v56  ;;  %v92_v48 = vld [vmem:[%s2689_s2 + $0x170] sm:$0xff] }
 0x212   :  { %v2014_v50 = vpack.c.bf16 %v93_v49, %v92_v48 }
 0x214   :  { %1997 = vmatpush3.bf16.msra.mxu0 %v1994_v56 }
 0x215   :  { %1999 = vmatprep.subr.bf16.mxu0 %v1998_v59 }
 0x218   :  { %2001 = vmatpush3.bf16.msra.mxu0 %v1998_v59 }
 0x219   :  { %2003 = vmatprep.subr.bf16.mxu0 %v2002_v62 }
 0x21c   :  { %2005 = vmatpush3.bf16.msra.mxu0 %v2002_v62 }
 0x21d   :  { %2007 = vmatprep.subr.bf16.mxu0 %v2006_v1 }
 0x220   :  { %2009 = vmatpush3.bf16.msra.mxu0 %v2006_v1 }
 0x221   :  { %2011 = vmatprep.subr.bf16.mxu0 %v2010_v4 }
 0x224   :  { %2013 = vmatpush3.bf16.msra.mxu0 %v2010_v4 }
 0x225   :  { %2015 = vmatprep.subr.bf16.mxu0 %v2014_v50 }
 0x228   :  { %2017 = vmatpush3.bf16.msra.mxu0 %v2014_v50 }
 0x2c8   :  { %v1612_v5 = vpop.f32.mrb[16].mxu0 }
 0x2c9   :  { %v487_v6 = vpop.f32.mrb[17].mxu0 }
 0x2ca   :  { %v1954_v7 = vpack.c.bf16 %v1612_v5, %v487_v6 }
 0x2cc   :  { %v1615_v8 = vpop.f32.mrb[18].mxu0  ;;  %1955 = vmatprep.subr.bf16.mxu1 %v1954_v7 }
 0x2cd   :  { %v497_v9 = vpop.f32.mrb[19].mxu0  ;;  %1957 = vmatpush3.bf16.msra.mxu1 %v1954_v7 }
 0x2ce   :  { %v1958_v10 = vpack.c.bf16 %v1615_v8, %v497_v9 }
 0x2d0   :  { %v1618_v11 = vpop.f32.mrb[20].mxu0  ;;  %1959 = vmatprep.subr.bf16.mxu1 %v1958_v10 }
 0x2d1   :  { %v507_v12 = vpop.f32.mrb[21].mxu0  ;;  %1961 = vmatpush3.bf16.msra.mxu1 %v1958_v10 }
 0x2d2   :  { %v1962_v13 = vpack.c.bf16 %v1618_v11, %v507_v12 }
 0x2d4   :  { %v1621_v14 = vpop.f32.mrb[22].mxu0  ;;  %1963 = vmatprep.subr.bf16.mxu1 %v1962_v13 }
 0x2d5   :  { %v517_v15 = vpop.f32.mrb[23].mxu0  ;;  %1965 = vmatpush3.bf16.msra.mxu1 %v1962_v13 }
 0x2d6   :  { %v1966_v16 = vpack.c.bf16 %v1621_v14, %v517_v15 }
 0x2d8   :  { %v1624_v17 = vpop.f32.mrb[24].mxu0  ;;  %1967 = vmatprep.subr.bf16.mxu1 %v1966_v16 }
 0x2d9   :  { %v527_v18 = vpop.f32.mrb[25].mxu0  ;;  %1969 = vmatpush3.bf16.msra.mxu1 %v1966_v16 }
 0x2da   :  { %v1970_v19 = vpack.c.bf16 %v1624_v17, %v527_v18 }
 0x2dc   :  { %v1627_v20 = vpop.f32.mrb[26].mxu0  ;;  %1971 = vmatprep.subr.bf16.mxu1 %v1970_v19 }
 0x2dd   :  { %v537_v21 = vpop.f32.mrb[27].mxu0  ;;  %1973 = vmatpush3.bf16.msra.mxu1 %v1970_v19 }
 0x2de   :  { %v1974_v37 = vpack.c.bf16 %v1627_v20, %v537_v21 }
 0x2e0   :  { %v1630_v38 = vpop.f32.mrb[28].mxu0  ;;  %1975 = vmatprep.subr.bf16.mxu1 %v1974_v37 }
 0x2e1   :  { %v547_v39 = vpop.f32.mrb[29].mxu0  ;;  %1977 = vmatpush3.bf16.msra.mxu1 %v1974_v37 }
 0x2e2   :  { %v1978_v41 = vpack.c.bf16 %v1630_v38, %v547_v39 }
 0x2e4   :  { %v1633_v43 = vpop.f32.mrb[30].mxu0  ;;  %1979 = vmatprep.subr.bf16.mxu1 %v1978_v41 }
 0x2e5   :  { %v557_v46 = vpop.f32.mrb[31].mxu0  ;;  %1981 = vmatpush3.bf16.msra.mxu1 %v1978_v41 }
 0x2e6   :  { %v1982_v47 = vpack.c.bf16 %v1633_v43, %v557_v46 }
 0x2e8   :  { %1983 = vmatprep.subr.bf16.mxu1 %v1982_v47 }
 0x2e9   :  { %1985 = vmatpush3.bf16.msra.mxu1 %v1982_v47 }
 0x2ec   :  { %1667 = vmatmul.mubr.f32.vlgmr.msra.gmra.mrb[16].mxu1 %v2265_v22 }
 0x2ed   :  { %1669 = vmatprep.mubr.f32.mxu1 %v2270_v23 }
 0x2f0   :  { %1670 = vmatmul.mubr.f32.gmra.mrb[18].mxu1 %v2277_v24 }
 0x2f1   :  { %1672 = vmatprep.mubr.f32.mxu1 %v2282_v25 }
 0x2f4   :  { %1673 = vmatmul.mubr.f32.gmra.mrb[20].mxu1 %v2289_v26 }
 0x2f5   :  { %1675 = vmatprep.mubr.f32.mxu1 %v2294_v27 }
 0x2f8   :  { %1676 = vmatmul.mubr.f32.gmra.mrb[22].mxu1 %v2301_v28 }
 0x2f9   :  { %1678 = vmatprep.mubr.f32.mxu1 %v2306_v29 }
 0x2fc   :  { %1679 = vmatmul.mubr.f32.gmra.mrb[24].mxu1 %v2313_v30 }
 0x2fd   :  { %1681 = vmatprep.mubr.f32.mxu1 %v2318_v31 }
 0x300   :  { %1682 = vmatmul.mubr.f32.gmra.mrb[26].mxu1 %v2325_v32 }
 0x301   :  { %1684 = vmatprep.mubr.f32.mxu1 %v2330_v33 }
 0x304   :  { %1685 = vmatmul.mubr.f32.gmra.mrb[28].mxu1 %v2337_v34 }
 0x305   :  { %1687 = vmatprep.mubr.f32.mxu1 %v2342_v35 }
 0x308   :  { %1688 = vmatmul.mubr.f32.gmra.mrb[30].mxu1 %v2349_v36 }
 0x309   :  { %1778 = vmatprep.mubr.f32.mxu1 %v2217_v40 }
 0x3bf   :  { %v1668_v45 = vpop.f32.mrb[16].mxu1 }
 0x3c0   :  { %v642_v53 = vadd.f32 %v1668_v45, %v569_v52  ;;  %v636_v54 = vpop.f32.mrb[17].mxu1 }
 0x3c1   :  { %v637_v55 = vadd.f32 %v636_v54, %v569_v52  ;;  %v94_v54 = vld [vmem:[%s2689_s2 + $0x180] sm:$0xff] }
 0x3c2   :  { %v716_v57 = vmax.f32 %v642_v53, 0.0 }
 0x3c3   :  { %v715_v40 = vmax.f32 %v637_v55, 0.0  ;;  %v1671_v56 = vpop.f32.mrb[18].mxu1  ;;  %v95_v55 = vld [vmem:[%s2689_s2 + $0x188] sm:$0xff] }
 0x3c4   :  { %v652_v58 = vadd.f32 %v1671_v56, %v569_v52  ;;  %v646_v59 = vpop.f32.mrb[19].mxu1  ;;  %v2443_v56 = vpack.c.bf16 %v95_v55, %v94_v54 }
 0x3c5   :  { %v647_v60 = vadd.f32 %v646_v59, %v569_v52  ;;  %1722 = vmatprep.mubr.f32.mxu0 %v715_v40  ;;  %v96_v40 = vld [vmem:[%s2689_s2 + $0x190] sm:$0xff]  ;;  %v99_v59 = vld [vmem:[%s2689_s2 + $0x1a8] sm:$0xff] }
 0x3c6   :  { %1723 = vmatmul.mubr.f32.vlgmr.msra.gmra.mrb[32].mxu0 %v716_v57  ;;  %v718_v63 = vmax.f32 %v652_v58, 0.0  ;;  %v98_v58 = vld [vmem:[%s2689_s2 + $0x1a0] sm:$0xff]  ;;  %2051 = vmatprep.subr.bf16.mxu0 %v2443_v56 }
 0x3c7   :  { %v717_v61 = vmax.f32 %v647_v60, 0.0  ;;  %v1674_v62 = vpop.f32.mrb[20].mxu1  ;;  %2053 = vmatpush3.bf16.msra.mxu0 %v2443_v56  ;;  %v2459_v60 = vpack.c.bf16 %v99_v59, %v98_v58 }
 0x3c8   :  { %v662_v0 = vadd.f32 %v1674_v62, %v569_v52  ;;  %v656_v1 = vpop.f32.mrb[21].mxu1  ;;  %v101_v62 = vld [vmem:[%s2689_s2 + $0x1b8] sm:$0xff] }
 0x3c9   :  { %v657_v2 = vadd.f32 %v656_v1, %v569_v52  ;;  %1725 = vmatprep.mubr.f32.mxu0 %v717_v61  ;;  %v100_v61 = vld [vmem:[%s2689_s2 + $0x1b0] sm:$0xff]  ;;  %v103_v1 = vld [vmem:[%s2689_s2 + $0x1c8] sm:$0xff] }
 0x3ca   :  { %1726 = vmatmul.mubr.f32.gmra.mrb[34].mxu0 %v718_v63  ;;  %v720_v5 = vmax.f32 %v662_v0, 0.0  ;;  %v2469_v63 = vpack.c.bf16 %v101_v62, %v100_v61  ;;  %v102_v0 = vld [vmem:[%s2689_s2 + $0x1c0] sm:$0xff] }
 0x3cb   :  { %v719_v3 = vmax.f32 %v657_v2, 0.0  ;;  %v1677_v4 = vpop.f32.mrb[22].mxu1  ;;  %v2479_v2 = vpack.c.bf16 %v103_v1, %v102_v0 }
 0x3cc   :  { %v672_v6 = vadd.f32 %v1677_v4, %v569_v52  ;;  %v666_v7 = vpop.f32.mrb[23].mxu1  ;;  %v105_v4 = vld [vmem:[%s2689_s2 + $0x1d8] sm:$0xff] }
 0x3cd   :  { %v667_v8 = vadd.f32 %v666_v7, %v569_v52  ;;  %1728 = vmatprep.mubr.f32.mxu0 %v719_v3  ;;  %v104_v3 = vld [vmem:[%s2689_s2 + $0x1d0] sm:$0xff]  ;;  %v107_v7 = vld [vmem:[%s2689_s2 + $0x1e8] sm:$0xff] }
 0x3ce   :  { %1729 = vmatmul.mubr.f32.gmra.mrb[36].mxu0 %v720_v5  ;;  %v722_v11 = vmax.f32 %v672_v6, 0.0  ;;  %v2489_v5 = vpack.c.bf16 %v105_v4, %v104_v3  ;;  %v106_v6 = vld [vmem:[%s2689_s2 + $0x1e0] sm:$0xff] }
 0x3cf   :  { %v721_v9 = vmax.f32 %v667_v8, 0.0  ;;  %v1680_v10 = vpop.f32.mrb[24].mxu1  ;;  %v2499_v8 = vpack.c.bf16 %v107_v7, %v106_v6 }
 0x3d0   :  { %v682_v12 = vadd.f32 %v1680_v10, %v569_v52  ;;  %v676_v13 = vpop.f32.mrb[25].mxu1 }
 0x3d1   :  { %v677_v14 = vadd.f32 %v676_v13, %v569_v52  ;;  %1731 = vmatprep.mubr.f32.mxu0 %v721_v9 }
 0x3d2   :  { %1732 = vmatmul.mubr.f32.gmra.mrb[38].mxu0 %v722_v11  ;;  %v724_v17 = vmax.f32 %v682_v12, 0.0 }
 0x3d3   :  { %v723_v15 = vmax.f32 %v677_v14, 0.0  ;;  %v1683_v16 = vpop.f32.mrb[26].mxu1 }
 0x3d4   :  { %v692_v18 = vadd.f32 %v1683_v16, %v569_v52  ;;  %v686_v19 = vpop.f32.mrb[27].mxu1 }
 0x3d5   :  { %v687_v20 = vadd.f32 %v686_v19, %v569_v52  ;;  %1734 = vmatprep.mubr.f32.mxu0 %v723_v15 }
 0x3d6   :  { %1735 = vmatmul.mubr.f32.gmra.mrb[40].mxu0 %v724_v17  ;;  %v726_v38 = vmax.f32 %v692_v18, 0.0 }
 0x3d7   :  { %v725_v21 = vmax.f32 %v687_v20, 0.0  ;;  %v1686_v37 = vpop.f32.mrb[28].mxu1 }
 0x3d8   :  { %v702_v39 = vadd.f32 %v1686_v37, %v569_v52  ;;  %v696_v41 = vpop.f32.mrb[29].mxu1 }
 0x3d9   :  { %v697_v43 = vadd.f32 %v696_v41, %v569_v52  ;;  %1737 = vmatprep.mubr.f32.mxu0 %v725_v21 }
 0x3da   :  { %1738 = vmatmul.mubr.f32.gmra.mrb[42].mxu0 %v726_v38  ;;  %v728_v48 = vmax.f32 %v702_v39, 0.0 }
 0x3db   :  { %v727_v46 = vmax.f32 %v697_v43, 0.0  ;;  %v1689_v47 = vpop.f32.mrb[30].mxu1 }
 0x3dc   :  { %v712_v49 = vadd.f32 %v1689_v47, %v569_v52  ;;  %v706_v50 = vpop.f32.mrb[31].mxu1 }
 0x3dd   :  { %v707_v51 = vadd.f32 %v706_v50, %v569_v52  ;;  %1740 = vmatprep.mubr.f32.mxu0 %v727_v46  ;;  %v97_v52 = vld [vmem:[%s2689_s2 + $0x198] sm:$0xff] }
 0x3de   :  { %1741 = vmatmul.mubr.f32.gmra.mrb[44].mxu0 %v728_v48  ;;  %v730_v53 = vmax.f32 %v712_v49, 0.0  ;;  %v2448_v57 = vpack.c.bf16 %v97_v52, %v96_v40 }
 0x3df   :  { %v729_v45 = vmax.f32 %v707_v51, 0.0 }
 0x3e0   :  { %2055 = vmatprep.subr.bf16.mxu0 %v2448_v57 }
 0x3e1   :  { %1743 = vmatprep.mubr.f32.mxu0 %v729_v45  ;;  %2057 = vmatpush3.bf16.msra.mxu0 %v2448_v57 }
 0x3e2   :  { %1744 = vmatmul.mubr.f32.gmra.mrb[46].mxu0 %v730_v53  ;;  %2059 = vmatprep.subr.bf16.mxu0 %v2459_v60 }
 0x3e5   :  { %2061 = vmatpush3.bf16.msra.mxu0 %v2459_v60 }
 0x3e6   :  { %2063 = vmatprep.subr.bf16.mxu0 %v2469_v63 }
 0x3e9   :  { %2065 = vmatpush3.bf16.msra.mxu0 %v2469_v63 }
 0x3ea   :  { %2067 = vmatprep.subr.bf16.mxu0 %v2479_v2 }
 0x3ed   :  { %2069 = vmatpush3.bf16.msra.mxu0 %v2479_v2 }
 0x3ee   :  { %2071 = vmatprep.subr.bf16.mxu0 %v2489_v5 }
 0x3f1   :  { %2073 = vmatpush3.bf16.msra.mxu0 %v2489_v5 }
 0x3f2   :  { %2075 = vmatprep.subr.bf16.mxu0 %v2499_v8 }
 0x3f5   :  { %2077 = vmatpush3.bf16.msra.mxu0 %v2499_v8 }
 0x499   :  { %v1724_v9 = vpop.f32.mrb[32].mxu0 }
 0x49a   :  { %v797_v10 = vpop.f32.mrb[33].mxu0 }
 0x49b   :  { %v2018_v11 = vpack.c.bf16 %v1724_v9, %v797_v10 }
 0x49d   :  { %v1727_v12 = vpop.f32.mrb[34].mxu0  ;;  %2019 = vmatprep.subr.bf16.mxu1 %v2018_v11 }
 0x49e   :  { %v807_v13 = vpop.f32.mrb[35].mxu0  ;;  %2021 = vmatpush3.bf16.msra.mxu1 %v2018_v11 }
 0x49f   :  { %v2022_v14 = vpack.c.bf16 %v1727_v12, %v807_v13 }
 0x4a1   :  { %v1730_v15 = vpop.f32.mrb[36].mxu0  ;;  %2023 = vmatprep.subr.bf16.mxu1 %v2022_v14 }
 0x4a2   :  { %v817_v16 = vpop.f32.mrb[37].mxu0  ;;  %2025 = vmatpush3.bf16.msra.mxu1 %v2022_v14 }
 0x4a3   :  { %v2026_v17 = vpack.c.bf16 %v1730_v15, %v817_v16 }
 0x4a5   :  { %v1733_v18 = vpop.f32.mrb[38].mxu0  ;;  %2027 = vmatprep.subr.bf16.mxu1 %v2026_v17 }
 0x4a6   :  { %v827_v19 = vpop.f32.mrb[39].mxu0  ;;  %2029 = vmatpush3.bf16.msra.mxu1 %v2026_v17 }
 0x4a7   :  { %v2030_v20 = vpack.c.bf16 %v1733_v18, %v827_v19 }
 0x4a9   :  { %v1736_v21 = vpop.f32.mrb[40].mxu0  ;;  %2031 = vmatprep.subr.bf16.mxu1 %v2030_v20 }
 0x4aa   :  { %v837_v37 = vpop.f32.mrb[41].mxu0  ;;  %2033 = vmatpush3.bf16.msra.mxu1 %v2030_v20 }
 0x4ab   :  { %v2034_v38 = vpack.c.bf16 %v1736_v21, %v837_v37 }
 0x4ad   :  { %v1739_v39 = vpop.f32.mrb[42].mxu0  ;;  %2035 = vmatprep.subr.bf16.mxu1 %v2034_v38 }
 0x4ae   :  { %v847_v41 = vpop.f32.mrb[43].mxu0  ;;  %2037 = vmatpush3.bf16.msra.mxu1 %v2034_v38 }
 0x4af   :  { %v2038_v43 = vpack.c.bf16 %v1739_v39, %v847_v41  ;;  %v1204_v39 = vsub.s32 3, %v2359_v42 }
 0x4b1   :  { %v1742_v46 = vpop.f32.mrb[44].mxu0  ;;  %2039 = vmatprep.subr.bf16.mxu1 %v2038_v43  ;;  %v2607_v41 = vrot.slane %v2365_v44, %v1204_v39 }
 0x4b2   :  { %v857_v47 = vpop.f32.mrb[45].mxu0  ;;  %2041 = vmatpush3.bf16.msra.mxu1 %v2038_v43 }
 0x4b3   :  { %v2042_v48 = vpack.c.bf16 %v1742_v46, %v857_v47 }
 0x4b5   :  { %v1745_v49 = vpop.f32.mrb[46].mxu0  ;;  %2043 = vmatprep.subr.bf16.mxu1 %v2042_v48 }
 0x4b6   :  { %v867_v50 = vpop.f32.mrb[47].mxu0  ;;  %2045 = vmatpush3.bf16.msra.mxu1 %v2042_v48 }
 0x4b7   :  { %v2046_v51 = vpack.c.bf16 %v1745_v49, %v867_v50 }
 0x4b9   :  { %2047 = vmatprep.subr.bf16.mxu1 %v2046_v51 }
 0x4ba   :  { %2049 = vmatpush3.bf16.msra.mxu1 %v2046_v51 }
 0x4bb   :  { %2082 = vmatprep.subr.bf16.mxu1 %v2443_v56 }
 0x4bd   :  { %1779 = vmatmul.mubr.f32.vlgmr.msra.gmra.mrb[32].mxu1 %v2265_v22  ;;  %v108_v22 = vld [vmem:[%s2689_s2 + $0x1f0] sm:$0xff] }
 0x4be   :  { %1781 = vmatprep.mubr.f32.mxu1 %v2270_v23  ;;  %2090 = vmatpush3.bf16.msra.mxu1 %v2443_v56  ;;  %v109_v23 = vld [vmem:[%s2689_s2 + $0x1f8] sm:$0xff] }
 0x4bf   :  { %2083 = vmatprep.subr.bf16.mxu1 %v2448_v57 }
 0x4c1   :  { %1782 = vmatmul.mubr.f32.gmra.mrb[34].mxu1 %v2277_v24  ;;  %v2078_v24 = vpack.c.bf16 %v109_v23, %v108_v22 }
 0x4c2   :  { %1784 = vmatprep.mubr.f32.mxu1 %v2282_v25  ;;  %2091 = vmatpush3.bf16.msra.mxu1 %v2448_v57  ;;  %v878_v25 = vsub.s32 2, %v2359_v42 }
 0x4c3   :  { %2084 = vmatprep.subr.bf16.mxu1 %v2459_v60  ;;  %2079 = vmatprep.subr.bf16.mxu0 %v2078_v24 }
 0x4c4   :  { %2081 = vmatpush3.bf16.msra.mxu0 %v2078_v24 }
 0x4c5   :  { %1785 = vmatmul.mubr.f32.gmra.mrb[36].mxu1 %v2289_v26  ;;  %v879_v26 = vrot.slane %v2365_v44, %v878_v25 }
 0x4c6   :  { %1787 = vmatprep.mubr.f32.mxu1 %v2294_v27  ;;  %2092 = vmatpush3.bf16.msra.mxu1 %v2459_v60 }
 0x4c7   :  { %2085 = vmatprep.subr.bf16.mxu1 %v2469_v63 }
 0x4c9   :  { %1788 = vmatmul.mubr.f32.gmra.mrb[38].mxu1 %v2301_v28 }
 0x4ca   :  { %1790 = vmatprep.mubr.f32.mxu1 %v2306_v29  ;;  %2093 = vmatpush3.bf16.msra.mxu1 %v2469_v63 }
 0x4cb   :  { %2086 = vmatprep.subr.bf16.mxu1 %v2479_v2 }
 0x4cd   :  { %1791 = vmatmul.mubr.f32.gmra.mrb[40].mxu1 %v2313_v30 }
 0x4ce   :  { %1793 = vmatprep.mubr.f32.mxu1 %v2318_v31  ;;  %2094 = vmatpush3.bf16.msra.mxu1 %v2479_v2 }
 0x4cf   :  { %2087 = vmatprep.subr.bf16.mxu1 %v2489_v5 }
 0x4d1   :  { %1794 = vmatmul.mubr.f32.gmra.mrb[42].mxu1 %v2325_v32 }
 0x4d2   :  { %1796 = vmatprep.mubr.f32.mxu1 %v2330_v33  ;;  %2095 = vmatpush3.bf16.msra.mxu1 %v2489_v5 }
 0x4d3   :  { %2088 = vmatprep.subr.bf16.mxu1 %v2499_v8 }
 0x4d5   :  { %1797 = vmatmul.mubr.f32.gmra.mrb[44].mxu1 %v2337_v34 }
 0x4d6   :  { %1799 = vmatprep.mubr.f32.mxu1 %v2342_v35  ;;  %2096 = vmatpush3.bf16.msra.mxu1 %v2499_v8 }
 0x4d7   :  { %2089 = vmatprep.subr.bf16.mxu1 %v2078_v24 }
 0x4d9   :  { %1800 = vmatmul.mubr.f32.gmra.mrb[46].mxu1 %v2349_v36 }
 0x4da   :  { %2097 = vmatpush3.bf16.msra.mxu1 %v2078_v24 }
 0x590   :  { %v1780_v27 = vpop.f32.mrb[32].mxu1 }
 0x591   :  { %v2541_v28 = vadd.f32 %v1780_v27, %v879_v26  ;;  %v946_v29 = vpop.f32.mrb[33].mxu1 }
 0x592   :  { %v2543_v30 = vadd.f32 %v946_v29, %v879_v26 }
 0x593   :  { %v1026_v33 = vmax.f32 %v2541_v28, 0.0 }
 0x594   :  { %v1025_v31 = vmax.f32 %v2543_v30, 0.0  ;;  %v1783_v32 = vpop.f32.mrb[34].mxu1 }
 0x595   :  { %v2547_v34 = vadd.f32 %v1783_v32, %v879_v26  ;;  %v956_v35 = vpop.f32.mrb[35].mxu1 }
 0x596   :  { %v2549_v36 = vadd.f32 %v956_v35, %v879_v26  ;;  %1834 = vmatprep.mubr.f32.mxu0 %v1025_v31 }
 0x597   :  { %1835 = vmatmul.mubr.f32.vlgmr.msra.gmra.mrb[48].mxu0 %v1026_v33  ;;  %v1028_v54 = vmax.f32 %v2547_v34, 0.0 }
 0x598   :  { %v1027_v45 = vmax.f32 %v2549_v36, 0.0  ;;  %v1786_v53 = vpop.f32.mrb[36].mxu1 }
 0x599   :  { %v2555_v55 = vadd.f32 %v1786_v53, %v879_v26  ;;  %v966_v40 = vpop.f32.mrb[37].mxu1 }
 0x59a   :  { %v2557_v56 = vadd.f32 %v966_v40, %v879_v26  ;;  %1837 = vmatprep.mubr.f32.mxu0 %v1027_v45 }
 0x59b   :  { %1838 = vmatmul.mubr.f32.gmra.mrb[50].mxu0 %v1028_v54  ;;  %v1030_v58 = vmax.f32 %v2555_v55, 0.0 }
 0x59c   :  { %v1029_v52 = vmax.f32 %v2557_v56, 0.0  ;;  %v1789_v57 = vpop.f32.mrb[38].mxu1 }
 0x59d   :  { %v2563_v59 = vadd.f32 %v1789_v57, %v879_v26  ;;  %v976_v60 = vpop.f32.mrb[39].mxu1 }
 0x59e   :  { %v2565_v61 = vadd.f32 %v976_v60, %v879_v26  ;;  %1840 = vmatprep.mubr.f32.mxu0 %v1029_v52 }
 0x59f   :  { %1841 = vmatmul.mubr.f32.gmra.mrb[52].mxu0 %v1030_v58  ;;  %v1032_v0 = vmax.f32 %v2563_v59, 0.0 }
 0x5a0   :  { %v1031_v62 = vmax.f32 %v2565_v61, 0.0  ;;  %v1792_v63 = vpop.f32.mrb[40].mxu1 }
 0x5a1   :  { %v2571_v1 = vadd.f32 %v1792_v63, %v879_v26  ;;  %v986_v2 = vpop.f32.mrb[41].mxu1 }
 0x5a2   :  { %v2573_v3 = vadd.f32 %v986_v2, %v879_v26  ;;  %1843 = vmatprep.mubr.f32.mxu0 %v1031_v62 }
 0x5a3   :  { %1844 = vmatmul.mubr.f32.gmra.mrb[54].mxu0 %v1032_v0  ;;  %v1034_v6 = vmax.f32 %v2571_v1, 0.0 }
 0x5a4   :  { %v1033_v4 = vmax.f32 %v2573_v3, 0.0  ;;  %v1795_v5 = vpop.f32.mrb[42].mxu1 }
 0x5a5   :  { %v2579_v7 = vadd.f32 %v1795_v5, %v879_v26  ;;  %v996_v8 = vpop.f32.mrb[43].mxu1 }
 0x5a6   :  { %v2581_v9 = vadd.f32 %v996_v8, %v879_v26  ;;  %1846 = vmatprep.mubr.f32.mxu1 %v1033_v4 }
 0x5a7   :  { %1847 = vmatmul.mubr.f32.vlgmr.msra.gmra.mrb[48].mxu1 %v1034_v6  ;;  %v1036_v12 = vmax.f32 %v2579_v7, 0.0 }
 0x5a8   :  { %v1035_v10 = vmax.f32 %v2581_v9, 0.0  ;;  %v1798_v11 = vpop.f32.mrb[44].mxu1 }
 0x5a9   :  { %v2587_v13 = vadd.f32 %v1798_v11, %v879_v26  ;;  %v1006_v14 = vpop.f32.mrb[45].mxu1 }
 0x5aa   :  { %v2589_v15 = vadd.f32 %v1006_v14, %v879_v26  ;;  %1849 = vmatprep.mubr.f32.mxu1 %v1035_v10 }
 0x5ab   :  { %1850 = vmatmul.mubr.f32.gmra.mrb[50].mxu1 %v1036_v12  ;;  %v1038_v18 = vmax.f32 %v2587_v13, 0.0 }
 0x5ac   :  { %v1037_v16 = vmax.f32 %v2589_v15, 0.0  ;;  %v1801_v17 = vpop.f32.mrb[46].mxu1 }
 0x5ad   :  { %v2595_v19 = vadd.f32 %v1801_v17, %v879_v26  ;;  %v1016_v20 = vpop.f32.mrb[47].mxu1 }
 0x5ae   :  { %v2597_v21 = vadd.f32 %v1016_v20, %v879_v26  ;;  %1852 = vmatprep.mubr.f32.mxu1 %v1037_v16 }
 0x5af   :  { %1853 = vmatmul.mubr.f32.gmra.mrb[52].mxu1 %v1038_v18  ;;  %v1040_v38 = vmax.f32 %v2595_v19, 0.0 }
 0x5b0   :  { %v1039_v37 = vmax.f32 %v2597_v21, 0.0 }
 0x5b2   :  { %1855 = vmatprep.mubr.f32.mxu1 %v1039_v37 }
 0x5b3   :  { %1856 = vmatmul.mubr.f32.gmra.mrb[54].mxu1 %v1040_v38 }
 0x66a   :  { %v1836_v43 = vpop.f32.mrb[48].mxu0 }
 0x66b   :  { %v1187_v46 = vadd.f32 %v1836_v43, %v1026_v33  ;;  %v1107_v47 = vpop.f32.mrb[49].mxu0 }
 0x66c   :  { %v1186_v48 = vadd.f32 %v1107_v47, %v1025_v31 }
 0x66d   :  { %v1207_v49 = vadd.f32 %v2607_v41, %v1187_v46 }
 0x66e   :  { %v1206_v50 = vadd.f32 %v2607_v41, %v1186_v48  ;;  %v1839_v51 = vpop.f32.mrb[50].mxu0 }
 0x66f   :  { %1223 = vst [vmem:[%s2692_s3 + $0x8] sm:$0xff] %v1207_v49  ;;  %v1189_v22 = vadd.f32 %v1839_v51, %v1028_v54  ;;  %v1117_v42 = vpop.f32.mrb[51].mxu0 }
 0x670   :  { %1222 = vst [vmem:[%s2692_s3] sm:$0xff] %v1206_v50  ;;  %v1188_v44 = vadd.f32 %v1117_v42, %v1027_v45 }
 0x671   :  { %v1209_v23 = vadd.f32 %v2607_v41, %v1189_v22 }
 0x672   :  { %v1208_v24 = vadd.f32 %v2607_v41, %v1188_v44  ;;  %v1842_v25 = vpop.f32.mrb[52].mxu0 }
 0x673   :  { %1225 = vst [vmem:[%s2692_s3 + $0x18] sm:$0xff] %v1209_v23  ;;  %v1191_v26 = vadd.f32 %v1842_v25, %v1030_v58  ;;  %v1127_v27 = vpop.f32.mrb[53].mxu0 }
 0x674   :  { %1224 = vst [vmem:[%s2692_s3 + $0x10] sm:$0xff] %v1208_v24  ;;  %v1190_v28 = vadd.f32 %v1127_v27, %v1029_v52 }
 0x675   :  { %v1211_v29 = vadd.f32 %v2607_v41, %v1191_v26 }
 0x676   :  { %v1210_v30 = vadd.f32 %v2607_v41, %v1190_v28  ;;  %v1845_v31 = vpop.f32.mrb[54].mxu0 }
 0x677   :  { %1227 = vst [vmem:[%s2692_s3 + $0x28] sm:$0xff] %v1211_v29  ;;  %v1193_v32 = vadd.f32 %v1845_v31, %v1032_v0  ;;  %v1137_v33 = vpop.f32.mrb[55].mxu0 }
 0x678   :  { %1226 = vst [vmem:[%s2692_s3 + $0x20] sm:$0xff] %v1210_v30  ;;  %v1192_v34 = vadd.f32 %v1137_v33, %v1031_v62 }
 0x679   :  { %v1213_v35 = vadd.f32 %v2607_v41, %v1193_v32 }
 0x67a   :  { %v1212_v36 = vadd.f32 %v2607_v41, %v1192_v34  ;;  %v1848_v45 = vpop.f32.mrb[48].mxu1 }
 0x67b   :  { %1229 = vst [vmem:[%s2692_s3 + $0x38] sm:$0xff] %v1213_v35  ;;  %v1195_v53 = vadd.f32 %v1848_v45, %v1034_v6  ;;  %v1147_v54 = vpop.f32.mrb[49].mxu1 }
 0x67c   :  { %1228 = vst [vmem:[%s2692_s3 + $0x30] sm:$0xff] %v1212_v36  ;;  %v1194_v55 = vadd.f32 %v1147_v54, %v1033_v4 }
 0x67d   :  { %v1215_v40 = vadd.f32 %v2607_v41, %v1195_v53 }
 0x67e   :  { %v1214_v56 = vadd.f32 %v2607_v41, %v1194_v55  ;;  %v1851_v52 = vpop.f32.mrb[50].mxu1 }
 0x67f   :  { %1231 = vst [vmem:[%s2692_s3 + $0x48] sm:$0xff] %v1215_v40  ;;  %v1197_v57 = vadd.f32 %v1851_v52, %v1036_v12  ;;  %v1157_v58 = vpop.f32.mrb[51].mxu1 }
 0x680   :  { %1230 = vst [vmem:[%s2692_s3 + $0x40] sm:$0xff] %v1214_v56  ;;  %v1196_v59 = vadd.f32 %v1157_v58, %v1035_v10 }
 0x681   :  { %v1217_v60 = vadd.f32 %v2607_v41, %v1197_v57 }
 0x682   :  { %v1216_v61 = vadd.f32 %v2607_v41, %v1196_v59  ;;  %v1854_v62 = vpop.f32.mrb[52].mxu1 }
 0x683   :  { %1233 = vst [vmem:[%s2692_s3 + $0x58] sm:$0xff] %v1217_v60  ;;  %v1199_v63 = vadd.f32 %v1854_v62, %v1038_v18  ;;  %v1167_v0 = vpop.f32.mrb[53].mxu1 }
 0x684   :  { %1232 = vst [vmem:[%s2692_s3 + $0x50] sm:$0xff] %v1216_v61  ;;  %v1198_v1 = vadd.f32 %v1167_v0, %v1037_v16 }
 0x685   :  { %v1219_v2 = vadd.f32 %v2607_v41, %v1199_v63 }
 0x686   :  { %v1218_v3 = vadd.f32 %v2607_v41, %v1198_v1  ;;  %v1857_v4 = vpop.f32.mrb[54].mxu1 }
 0x687   :  { %1235 = vst [vmem:[%s2692_s3 + $0x68] sm:$0xff] %v1219_v2  ;;  %v1201_v5 = vadd.f32 %v1857_v4, %v1040_v38  ;;  %v1177_v6 = vpop.f32.mrb[55].mxu1 }
 0x688   :  { %1234 = vst [vmem:[%s2692_s3 + $0x60] sm:$0xff] %v1218_v3  ;;  %v1200_v7 = vadd.f32 %v1177_v6, %v1039_v37 }
 0x689   :  { %v1221_v8 = vadd.f32 %v2607_v41, %v1201_v5 }
 0x68a   :  { %v1220_v9 = vadd.f32 %v2607_v41, %v1200_v7 }
 0x68b   :  { %1237 = vst [vmem:[%s2692_s3 + $0x78] sm:$0xff] %v1221_v8 }
 0x68c   :  { %1236 = vst [vmem:[%s2692_s3 + $0x70] sm:$0xff] %v1220_v9 }

</bundles_post_ra>
